<compile_context>
chip_gen: v6e
topology: v6e:2x2x1
jax: 0.10.0
libtpu: 0.0.40
codegen_flags: <defaults>
</compile_context>

<pallas_src>
import jax
import jax.numpy as jnp
from jax.experimental import pallas as pl
from jax.experimental.pallas import tpu as pltpu

OUT_H, OUT_W = 128, 128


def nearest_resize_kernel(sel_h_ref, sel_w_ref, x_ref, o_ref):
    # sel_h_ref: (OUT_H, H)  one-hot rows: sel_h[o, i] = (i == (o*H)//OUT_H)
    # sel_w_ref: (W, OUT_W)  one-hot cols: sel_w[i, o] = (i == (o*W)//OUT_W)
    # x_ref:     (P, H, W)
    # o_ref:     (P, OUT_H, OUT_W)
    P, H, W = x_ref.shape
    OW = o_ref.shape[2]

    sel_h = sel_h_ref[...]
    sel_w = sel_w_ref[...]
    cdt = sel_w.dtype                        # matmul operand dtype (f32 / bf16)

    # Width expansion: one big lane-dense matmul (P*H, W) @ (W, OUT_W).
    x = x_ref[...].astype(cdt).reshape(P * H, W)
    xw = jnp.dot(x, sel_w, preferred_element_type=jnp.float32)   # (P*H, OW)
    xw = xw.astype(cdt).reshape(P, H, OW)    # exact: single 1.0-weighted term

    # Height expansion: per-plane (OUT_H, H) @ (H, OUT_W), stored directly
    # into the lane-dense output block.
    for p in range(P):
        o_ref[p] = jnp.dot(
            sel_h, xw[p], preferred_element_type=jnp.float32
        ).astype(o_ref.dtype)


def _selectors(H, W, dtype):
    # PyTorch 'nearest' index math, built once on the host/XLA side.
    src_h = (jnp.arange(OUT_H, dtype=jnp.int32) * H) // OUT_H
    src_w = (jnp.arange(OUT_W, dtype=jnp.int32) * W) // OUT_W
    sel_h = (jnp.arange(H, dtype=jnp.int32)[None, :] == src_h[:, None]).astype(dtype)
    sel_w = (jnp.arange(W, dtype=jnp.int32)[:, None] == src_w[None, :]).astype(dtype)
    return sel_h, sel_w  # (OUT_H, H), (W, OUT_W)


def resize_nearest_128(x, plane_batch=None):
    """Pallas equivalent of F.interpolate(x, size=(128, 128), mode='nearest').

    x: (N, C, H, W) -> (N, C, 128, 128)
    """
    N, C, H, W = x.shape
    NC = N * C

    if plane_batch is None:
        # >= 2 grid steps when possible (helps v7x dual-TC sharding), capped
        # so double-buffered (P, 128, 128) output blocks stay small in VMEM
        # (P=32 f32 -> 2 x 2 MiB, comfortably under v5e/v6e/v7x scoped limits).
        plane_batch = min(32, max(1, -(-NC // 2)))
    P = plane_batch

    n_chunks = pl.cdiv(NC, P)
    NCp = n_chunks * P

    xf = x.reshape(NC, H, W)
    if NCp != NC:
        xf = jnp.pad(xf, ((0, NCp - NC), (0, 0), (0, 0)))

    # 0/1 selectors are exact in bf16; only use bf16 operands for bf16 inputs.
    sel_dtype = jnp.bfloat16 if x.dtype == jnp.bfloat16 else jnp.float32
    sel_h, sel_w = _selectors(H, W, sel_dtype)

    itemsize = jnp.dtype(x.dtype).itemsize
    cost = pl.CostEstimate(
        flops=2 * NCp * (H * W * OUT_W + OUT_H * H * OUT_W),
        transcendentals=0,
        bytes_accessed=NCp * (H * W + OUT_H * OUT_W) * itemsize,
    )

    out = pl.pallas_call(
        nearest_resize_kernel,
        out_shape=jax.ShapeDtypeStruct((NCp, OUT_H, OUT_W), x.dtype),
        grid_spec=pltpu.PrefetchScalarGridSpec(
            num_scalar_prefetch=0,
            grid=(n_chunks,),
            in_specs=[
                pl.BlockSpec((OUT_H, H), lambda i: (0, 0)),    # sel_h, resident
                pl.BlockSpec((W, OUT_W), lambda i: (0, 0)),    # sel_w, resident
                pl.BlockSpec((P, H, W), lambda i: (i, 0, 0)),  # P planes / step
            ],
            out_specs=pl.BlockSpec((P, OUT_H, OUT_W), lambda i: (i, 0, 0)),
        ),
        compiler_params=pltpu.CompilerParams(
            dimension_semantics=("parallel",),
            vmem_limit_bytes=32 * 1024 * 1024,
        ),
        cost_estimate=cost,
    )(sel_h, sel_w, xf)

    return out[:NC].reshape(N, C, OUT_H, OUT_W)


def resize_nearest_128_ref(x):
    # Pure-JAX reference with PyTorch 'nearest' index math.
    N, C, H, W = x.shape
    src_h = (jnp.arange(OUT_H) * H) // OUT_H
    src_w = (jnp.arange(OUT_W) * W) // OUT_W
    return x[:, :, src_h][:, :, :, src_w]


if __name__ == "__main__":
    key = jax.random.PRNGKey(0)
    x = jax.random.normal(key, (2, 4, 16, 16), dtype=jnp.float32)

    out = jax.block_until_ready(resize_nearest_128(x))

    ref = resize_nearest_128_ref(x)
    assert out.shape == (2, 4, 128, 128), out.shape
    assert jnp.allclose(out, ref), "mismatch vs reference nearest-neighbor resize"

    print("KERNEL_OK")
</pallas_src>

<mosaic_0001>
module attributes {stable_mosaic.version = 11 : i64} {
  func.func @nearest_resize_kernel(%arg0: i32, %arg1: memref<128x16xf32, #tpu.memory_space<vmem>>, %arg2: memref<16x128xf32, #tpu.memory_space<vmem>>, %arg3: memref<4x16x16xf32, #tpu.memory_space<vmem>>, %arg4: memref<4x128x128xf32, #tpu.memory_space<vmem>>) attributes {dimension_semantics = [#tpu.dimension_semantics<parallel>], iteration_bounds = array<i64: 2>, scalar_prefetch = 0 : i64, scratch_operands = 0 : i64, tpu.core_type = #tpu.core_type<tc>, window_params = [{pipeline_mode = #tpu.pipeline_mode<synchronous>, transform_indices = @transform_0, window_bounds = array<i64: 128, 16>}, {pipeline_mode = #tpu.pipeline_mode<synchronous>, transform_indices = @transform_1, window_bounds = array<i64: 16, 128>}, {transform_indices = @transform_2, window_bounds = array<i64: 4, 16, 16>}, {transform_indices = @transform_3, window_bounds = array<i64: 4, 128, 128>}]} {
    %c0 = arith.constant 0 : index
    %c0_0 = arith.constant 0 : index
    %0 = vector.load %arg1[%c0, %c0_0] : memref<128x16xf32, #tpu.memory_space<vmem>>, vector<128x16xf32>
    %c0_1 = arith.constant 0 : index
    %c0_2 = arith.constant 0 : index
    %1 = vector.load %arg2[%c0_1, %c0_2] : memref<16x128xf32, #tpu.memory_space<vmem>>, vector<16x128xf32>
    %c0_3 = arith.constant 0 : index
    %c0_4 = arith.constant 0 : index
    %c0_5 = arith.constant 0 : index
    %2 = vector.load %arg3[%c0_3, %c0_4, %c0_5] : memref<4x16x16xf32, #tpu.memory_space<vmem>>, vector<4x16x16xf32>
    %3 = vector.shape_cast %2 : vector<4x16x16xf32> to vector<64x16xf32>
    %cst = arith.constant dense<0.000000e+00> : vector<64x128xf32>
    %4 = tpu.matmul %3, %1, %cst {dimension_numbers = #tpu.dot_dimension_numbers<[1], [0], [0], [1], [0, 0, 1, 1], [], []>} : vector<64x16xf32>, vector<16x128xf32>, vector<64x128xf32> -> vector<64x128xf32>
    %5 = vector.shape_cast %4 : vector<64x128xf32> to vector<4x16x128xf32>
    %6 = vector.extract_strided_slice %5 {offsets = [0, 0, 0], sizes = [1, 16, 128], strides = [1, 1, 1]} : vector<4x16x128xf32> to vector<1x16x128xf32>
    %7 = vector.shape_cast %6 : vector<1x16x128xf32> to vector<16x128xf32>
    %cst_6 = arith.constant dense<0.000000e+00> : vector<128x128xf32>
    %8 = tpu.matmul %0, %7, %cst_6 {dimension_numbers = #tpu.dot_dimension_numbers<[1], [0], [0], [1], [0, 0, 1, 1], [], []>} : vector<128x16xf32>, vector<16x128xf32>, vector<128x128xf32> -> vector<128x128xf32>
    %c0_7 = arith.constant 0 : index
    %c0_8 = arith.constant 0 : index
    %c0_9 = arith.constant 0 : index
    %9 = vector.load %arg4[%c0_7, %c0_8, %c0_9] : memref<4x128x128xf32, #tpu.memory_space<vmem>>, vector<1x128x128xf32>
    %10 = vector.shape_cast %9 : vector<1x128x128xf32> to vector<128x128xf32>
    %11 = vector.shape_cast %8 : vector<128x128xf32> to vector<1x128x128xf32>
    tpu.vector_store %arg4[%c0_7, %c0_8, %c0_9], %11 {strides = array<i32>} : memref<4x128x128xf32, #tpu.memory_space<vmem>>, vector<1x128x128xf32>,
    %12 = vector.extract_strided_slice %5 {offsets = [1, 0, 0], sizes = [1, 16, 128], strides = [1, 1, 1]} : vector<4x16x128xf32> to vector<1x16x128xf32>
    %13 = vector.shape_cast %12 : vector<1x16x128xf32> to vector<16x128xf32>
    %cst_10 = arith.constant dense<0.000000e+00> : vector<128x128xf32>
    %14 = tpu.matmul %0, %13, %cst_10 {dimension_numbers = #tpu.dot_dimension_numbers<[1], [0], [0], [1], [0, 0, 1, 1], [], []>} : vector<128x16xf32>, vector<16x128xf32>, vector<128x128xf32> -> vector<128x128xf32>
    %c1 = arith.constant 1 : index
    %c0_11 = arith.constant 0 : index
    %c0_12 = arith.constant 0 : index
    %15 = vector.load %arg4[%c1, %c0_11, %c0_12] : memref<4x128x128xf32, #tpu.memory_space<vmem>>, vector<1x128x128xf32>
    %16 = vector.shape_cast %15 : vector<1x128x128xf32> to vector<128x128xf32>
    %17 = vector.shape_cast %14 : vector<128x128xf32> to vector<1x128x128xf32>
    tpu.vector_store %arg4[%c1, %c0_11, %c0_12], %17 {strides = array<i32>} : memref<4x128x128xf32, #tpu.memory_space<vmem>>, vector<1x128x128xf32>,
    %18 = vector.extract_strided_slice %5 {offsets = [2, 0, 0], sizes = [1, 16, 128], strides = [1, 1, 1]} : vector<4x16x128xf32> to vector<1x16x128xf32>
    %19 = vector.shape_cast %18 : vector<1x16x128xf32> to vector<16x128xf32>
    %cst_13 = arith.constant dense<0.000000e+00> : vector<128x128xf32>
    %20 = tpu.matmul %0, %19, %cst_13 {dimension_numbers = #tpu.dot_dimension_numbers<[1], [0], [0], [1], [0, 0, 1, 1], [], []>} : vector<128x16xf32>, vector<16x128xf32>, vector<128x128xf32> -> vector<128x128xf32>
    %c2 = arith.constant 2 : index
    %c0_14 = arith.constant 0 : index
    %c0_15 = arith.constant 0 : index
    %21 = vector.load %arg4[%c2, %c0_14, %c0_15] : memref<4x128x128xf32, #tpu.memory_space<vmem>>, vector<1x128x128xf32>
    %22 = vector.shape_cast %21 : vector<1x128x128xf32> to vector<128x128xf32>
    %23 = vector.shape_cast %20 : vector<128x128xf32> to vector<1x128x128xf32>
    tpu.vector_store %arg4[%c2, %c0_14, %c0_15], %23 {strides = array<i32>} : memref<4x128x128xf32, #tpu.memory_space<vmem>>, vector<1x128x128xf32>,
    %24 = vector.extract_strided_slice %5 {offsets = [3, 0, 0], sizes = [1, 16, 128], strides = [1, 1, 1]} : vector<4x16x128xf32> to vector<1x16x128xf32>
    %25 = vector.shape_cast %24 : vector<1x16x128xf32> to vector<16x128xf32>
    %cst_16 = arith.constant dense<0.000000e+00> : vector<128x128xf32>
    %26 = tpu.matmul %0, %25, %cst_16 {dimension_numbers = #tpu.dot_dimension_numbers<[1], [0], [0], [1], [0, 0, 1, 1], [], []>} : vector<128x16xf32>, vector<16x128xf32>, vector<128x128xf32> -> vector<128x128xf32>
    %c3 = arith.constant 3 : index
    %c0_17 = arith.constant 0 : index
    %c0_18 = arith.constant 0 : index
    %27 = vector.load %arg4[%c3, %c0_17, %c0_18] : memref<4x128x128xf32, #tpu.memory_space<vmem>>, vector<1x128x128xf32>
    %28 = vector.shape_cast %27 : vector<1x128x128xf32> to vector<128x128xf32>
    %29 = vector.shape_cast %26 : vector<128x128xf32> to vector<1x128x128xf32>
    tpu.vector_store %arg4[%c3, %c0_17, %c0_18], %29 {strides = array<i32>} : memref<4x128x128xf32, #tpu.memory_space<vmem>>, vector<1x128x128xf32>,
    return
  }
  func.func @transform_0(%arg0: i32) -> (i32, i32) {
    %c0_i32 = arith.constant 0 : i32
    %c0_i32_0 = arith.constant 0 : i32
    %c0_i32_1 = arith.constant 0 : i32
    return %c0_i32, %c0_i32_0 : i32, i32
  }
  func.func @transform_1(%arg0: i32) -> (i32, i32) {
    %c0_i32 = arith.constant 0 : i32
    %c0_i32_0 = arith.constant 0 : i32
    %c0_i32_1 = arith.constant 0 : i32
    return %c0_i32, %c0_i32_0 : i32, i32
  }
  func.func @transform_2(%arg0: i32) -> (i32, i32, i32) {
    %c0_i32 = arith.constant 0 : i32
    %c0_i32_0 = arith.constant 0 : i32
    %c0_i32_1 = arith.constant 0 : i32
    return %arg0, %c0_i32, %c0_i32_0 : i32, i32, i32
  }
  func.func @transform_3(%arg0: i32) -> (i32, i32, i32) {
    %c0_i32 = arith.constant 0 : i32
    %c0_i32_0 = arith.constant 0 : i32
    %c0_i32_1 = arith.constant 0 : i32
    return %arg0, %c0_i32, %c0_i32_0 : i32, i32, i32
  }
}

</mosaic_0001>

<bundles_post_ra>
// kernel: tpu_custom_call.1
= control target key start
LH: loop header
LB: loop body
LE: loop exit
PB: predicated region body
PF: predicated region fallthrough
CT: control target
= control target key end

     0   :  { %8 = vsyncpa [#allocation3], 0  ;;  %s1890_s0 = inlined_call_operand.vmem [shape: f32[128,16], index: 0, kind: input, shape index: {}]   ;;  %s1891_s1 = inlined_call_operand.vmem [shape: f32[16,128], index: 1, kind: input, shape index: {}]   ;;  %s1892_s2 = inlined_call_operand.vmem [shape: f32[8,16,16], index: 2, kind: input, shape index: {}]   ;;  %s1893_s3 = inlined_call_operand.hbm [shape: f32[8,128,128], index: 3, kind: output, shape index: {}]  }
   0x1   :  { %10 = vsyncpa [#allocation3 + $0x1], 0  ;;  %s1580_s12 = smov 0   ;;  %s1582_s13 = smov 0  }
   0x2   :  { %s1584_s14 = smov 0   ;;  %s1586_s15 = smov 0  }
   0x3 LB: > { %s1601_s16 = sadd.s32 4294967295, %s1555_s15   ;;  %s1103_s17 = sadd.s32 4294967294, %s1555_s15   ;;  %s1555_s15 = sphi %s1586_s15, %s1899_s15   ;;  %s1551_s14 = sphi %s1584_s14, %s1898_s14   ;;  %s1547_s13 = sphi %s1582_s13, %s1897_s13   ;;  %s1543_s12 = sphi %s1580_s12, %s1896_s12  }
   0x4   : > { %s1605_s18 = sadd.s32 1, %s1555_s15   ;;  %s91_s19 = sadd.s32 1, %s1551_s14 }
   0x5   : > { %s88_s20 = ssub.s32 %s1555_s15, %s1605_s18  ;;  %p101_p0 = scmp.ne.s32.totalorder %s1551_s14, %s1547_s13 }
   0x6   : > { %p89_p1 = scmp.eq.s32.totalorder %s88_s20, 0  ;;  %p102_p2 = scmp.eq.s32.totalorder %s1601_s16, 1 }
   0x7   : > { %p107_p3 = scmp.ne.s32.totalorder %s1547_s13, %s1543_s12  ;;  %p108_p4 = scmp.eq.s32.totalorder %s1103_s17, 1 }
   0x8   : > { %s1616_s21 = scalar_select %p89_p1, %s1551_s14, %s91_s19  }
   0x9   : > { %p1618_p5 = por %p102_p2, %p101_p0  ;;  %p1622_p6 = por %p108_p4, %p107_p3 }
   0xa   : > { %p1106_p7 = scmp.ge.s32.totalorder %s1555_s15, 1  ;;  %p142_p8 = scmp.lt.s32.totalorder %s1555_s15, 3 }
   0xc   : > { %p143_p9 = pnand %p1106_p7, %p142_p8 }
   0xd   : > { %s1108_s28 = sshll.u32 (!%p143_p9), %s1601_s16, 2  ;;  %s1557_s11 = smov (!%p143_p9), [#allocation2]  }
   0xe   : > { %146 = sbr.rel (%p143_p9) target bundleno = 496 (0x1f0), region = 32  ;;  %p168_p10 = scmp.lt.s32.totalorder (!%p143_p9), %s1108_s28, 7 }
   0xf   : > { %s1499_s17 = sshll.u32 (!%p143_p9), %s1557_s11, 4  ;;  %s1500_s17 = int_to_ptr.vmem [resolvable:$false] %s1499_s17 }
  0x10   : > { %s1501_s19 = scalar_lea.vmem (!%p143_p9), %s1500_s17, 16384 }
  0x13   : > { %v192_v0 = vld [vmem:[%s1891_s1 + $0x8] sm:$0xff]  ;;  %v191_v1 = vld [vmem:[%s1891_s1] sm:$0xff]  ;;  %s1901_s28 = smov (!%p168_p10, %s1108_s28), 7  ;;  %vm201_vm0 = vcmask 130048   ;;  %v177_v19 = vld [vmem:[%s1890_s0 + $0x10] sm:$0xff] }
  0x14   : > { %1322 = vmatprep.subr.mxu0 %v192_v0  ;;  %1450 = vmatprep.subr.mxu1 %v192_v0  ;;  %s1237_s29 = sshll.u32 %s1901_s28, 4  ;;  %v1649_v10 = vld [vmem:[%s1890_s0] sm:$0xff]  ;;  %v1658_v15 = vld [vmem:[%s1890_s0 + $0x8] sm:$0xff]  ;;  %v178_v21 = vld [vmem:[%s1890_s0 + $0x18] sm:$0xff] }
  0x15   : > { %1323 = vmatpush3.msra.mxu0 %v192_v0  ;;  %1452 = vmatpush3.msra.mxu1 %v192_v0  ;;  %s172_s5 = scalar_lea.vmem %s1892_s2, %s1237_s29  ;;  %v179_v22 = vld [vmem:[%s1890_s0 + $0x20] sm:$0xff]  ;;  %v180_v23 = vld [vmem:[%s1890_s0 + $0x28] sm:$0xff]  ;;  %v181_v24 = vld [vmem:[%s1890_s0 + $0x30] sm:$0xff]  ;;  %s164_s29 = sand.u32 1, %s1547_s13  }
  0x16   : > { %1324 = vmatprep.subr.mxu0 %v191_v1  ;;  %1451 = vmatprep.subr.mxu1 %v191_v1  ;;  %v193_v2 = vld [vmem:[%s172_s5] sm:$0xff]  ;;  %v194_v3 = vld [vmem:[%s172_s5 + $0x8] sm:$0xff]  ;;  %v195_v4 = vld [vmem:[%s172_s5 + $0x10] sm:$0xff]  ;;  %s1107_s30 = sshll.u32 %s164_s29, 9 }
  0x17   : > { %1325 = vmatpush3.msra.mxu0 %v191_v1  ;;  %1453 = vmatpush3.msra.mxu1 %v191_v1  ;;  %v197_v5 = vld [vmem:[%s172_s5 + $0x20] sm:$0xff]  ;;  %v198_v6 = vld [vmem:[%s172_s5 + $0x28] sm:$0xff]  ;;  %v199_v7 = vld [vmem:[%s172_s5 + $0x30] sm:$0xff]  ;;  %s1773_s4 = scalar_lea.vmem [#allocation2], %s1107_s30 }
  0x18   : > { %1326 = vmatprep.mubr.msk.f32.mxu0 %vm201_vm0, %v193_v2  ;;  %1332 = vmatprep.mubr.msk.f32.mxu1 %vm201_vm0, %v197_v5  ;;  %v196_v8 = vld [vmem:[%s172_s5 + $0x18] sm:$0xff]  ;;  %v183_v26 = vld [vmem:[%s1890_s0 + $0x40] sm:$0xff]  ;;  %v184_v27 = vld [vmem:[%s1890_s0 + $0x48] sm:$0xff]  ;;  %s1041_s6 = sshll.u32 %s1773_s4, 4  ;;  %s1843_s6 = int_to_ptr.vmem [resolvable:$true] %s1041_s6 }
  0x19   : > { %1327 = vmatmul.mubr.msk.f32.vlgmr.msra.gmra.mxu0 %vm201_vm0, %v194_v3  ;;  %1333 = vmatmul.mubr.msk.f32.vlgmr.msra.gmra.mxu1 %vm201_vm0, %v198_v6  ;;  %v200_v9 = vld [vmem:[%s172_s5 + $0x38] sm:$0xff]  ;;  %v185_v28 = vld [vmem:[%s1890_s0 + $0x50] sm:$0xff]  ;;  %v187_v30 = vld [vmem:[%s1890_s0 + $0x60] sm:$0xff]  ;;  %s1239_s5 = sshll.u32 %s1601_s16, 13  ;;  %s1850_s16 = scalar_lea.sflag [#allocation3], %s164_s29 }
  0x1a   : > { %1329 = vmatprep.mubr.msk.f32.mxu0 %vm201_vm0, %v195_v4  ;;  %1335 = vmatprep.mubr.msk.f32.mxu1 %vm201_vm0, %v199_v7  ;;  %v182_v25 = vld [vmem:[%s1890_s0 + $0x38] sm:$0xff]  ;;  %v188_v31 = vld [vmem:[%s1890_s0 + $0x68] sm:$0xff]  ;;  %v189_v32 = vld [vmem:[%s1890_s0 + $0x70] sm:$0xff]  ;;  %s1841_s9 = scalar_lea.hbm %s1893_s3, %s1239_s5  ;;  %s1495_s10 = scalar_lea.vmem %s1843_s6, 8192 }
  0x1b   : > { %v186_v29 = vld [vmem:[%s1890_s0 + $0x58] sm:$0xff]  ;;  %p1496_p11 = scmp.ne.s32.totalorder %s1843_s6, %s1495_s10  ;;  %p1502_p0 = scmp.lt.s32.totalorder %s1843_s6, %s1500_s17 }
  0x1c   : > { %v190_v33 = vld [vmem:[%s1890_s0 + $0x78] sm:$0xff]  ;;  %p1503_p1 = scmp.lt.s32.totalorder %s1501_s19, %s1495_s10 }
  0x1d   : > { %1330 = vmatmul.mubr.msk.f32.gmra.mxu0 %vm201_vm0, %v196_v8  ;;  %1336 = vmatmul.mubr.msk.f32.gmra.mxu1 %vm201_vm0, %v200_v9  ;;  %p1497_p12 = pnand %p1496_p11, %p1618_p5 }
  0x1e   : > { %1342 = vmatprep.mubr.msk.f32.mxu1 %vm201_vm0, %v1649_v10  ;;  %1370 = vmatprep.mubr.msk.f32.mxu0 %vm201_vm0, %v1649_v10  ;;  %p1504_p2 = por %p1503_p1, %p1502_p0 }
  0x1f   : > { %p1498_p13 = pneg %p1497_p12 }
  0x21   : > { %p1505_p3 = pnand %p1504_p2, %p1498_p13 }
  0xd9   : > { %v1328_v11 = vpop.f32.mrf.mxu0  ;;  %v1334_v12 = vpop.f32.mrf.mxu1 }
  0xda   : > { %1338 = vmatprep.subr.mxu1 %v1328_v11 }
  0xdb   : > { %v292_v13 = vpop.f32.mrf.mxu0  ;;  %1339 = vmatpush3.msra.mxu1 %v1328_v11  ;;  %v312_v14 = vpop.f32.mrf.mxu1 }
  0xdc   : > { %1340 = vmatprep.subr.mxu1 %v292_v13 }
  0xdd   : > { %v1331_v16 = vpop.f32.mrf.mxu0  ;;  %1341 = vmatpush3.msra.mxu1 %v292_v13  ;;  %v1337_v17 = vpop.f32.mrf.mxu1 }
  0xde   : > { %1366 = vmatprep.subr.mxu0 %v1331_v16  ;;  %1394 = vmatprep.subr.mxu1 %v1334_v12 }
  0xdf   : > { %v302_v18 = vpop.f32.mrf.mxu0  ;;  %1367 = vmatpush3.msra.mxu0 %v1331_v16  ;;  %1343 = vmatmul.mubr.msk.f32.vlgmr.msra.gmra.mxu1 %vm201_vm0, %v1658_v15  ;;  %v322_v20 = vpop.f32.mrf.mxu1 }
  0xe0   : > { %1368 = vmatprep.subr.mxu0 %v302_v18  ;;  %1395 = vmatpush3.msra.mxu1 %v1334_v12 }
  0xe1   : > { %1369 = vmatpush3.msra.mxu0 %v302_v18  ;;  %1396 = vmatprep.subr.mxu1 %v312_v14 }
  0xe2   : > { %1397 = vmatpush3.msra.mxu1 %v312_v14  ;;  %1422 = vmatprep.subr.mxu0 %v1337_v17 }
  0xe3   : > { %1371 = vmatmul.mubr.msk.f32.vlgmr.msra.gmra.mxu0 %vm201_vm0, %v1658_v15  ;;  %1345 = vmatprep.mubr.msk.f32.mxu1 %vm201_vm0, %v177_v19 }
  0xe4   : > { %1423 = vmatpush3.msra.mxu0 %v1337_v17  ;;  %1373 = vmatprep.mubr.msk.f32.mxu0 %vm201_vm0, %v177_v19 }
  0xe5   : > { %1424 = vmatprep.subr.mxu0 %v322_v20  ;;  %1346 = vmatmul.mubr.msk.f32.gmra.mxu1 %vm201_vm0, %v178_v21 }
  0xe6   : > { %1425 = vmatpush3.msra.mxu0 %v322_v20  ;;  %1348 = vmatprep.mubr.msk.f32.mxu1 %vm201_vm0, %v179_v22 }
  0xe7   : > { %1374 = vmatmul.mubr.msk.f32.gmra.mxu0 %vm201_vm0, %v178_v21 }
  0xe8   : > { %1376 = vmatprep.mubr.msk.f32.mxu0 %vm201_vm0, %v179_v22 }
  0xe9   : > { %1349 = vmatmul.mubr.msk.f32.gmra.mxu1 %vm201_vm0, %v180_v23 }
  0xea   : > { %1351 = vmatprep.mubr.msk.f32.mxu1 %vm201_vm0, %v181_v24 }
  0xeb   : > { %1377 = vmatmul.mubr.msk.f32.gmra.mxu0 %vm201_vm0, %v180_v23 }
  0xec   : > { %1379 = vmatprep.mubr.msk.f32.mxu0 %vm201_vm0, %v181_v24 }
  0xed   : > { %1352 = vmatmul.mubr.msk.f32.gmra.mxu1 %vm201_vm0, %v182_v25 }
  0xee   : > { %1354 = vmatprep.mubr.msk.f32.mxu1 %vm201_vm0, %v183_v26 }
  0xef   : > { %1380 = vmatmul.mubr.msk.f32.gmra.mxu0 %vm201_vm0, %v182_v25 }
  0xf0   : > { %1382 = vmatprep.mubr.msk.f32.mxu0 %vm201_vm0, %v183_v26 }
  0xf1   : > { %1355 = vmatmul.mubr.msk.f32.gmra.mxu1 %vm201_vm0, %v184_v27 }
  0xf2   : > { %1357 = vmatprep.mubr.msk.f32.mxu1 %vm201_vm0, %v185_v28 }
  0xf3   : > { %1383 = vmatmul.mubr.msk.f32.gmra.mxu0 %vm201_vm0, %v184_v27 }
  0xf4   : > { %1385 = vmatprep.mubr.msk.f32.mxu0 %vm201_vm0, %v185_v28 }
  0xf5   : > { %1358 = vmatmul.mubr.msk.f32.gmra.mxu1 %vm201_vm0, %v186_v29 }
  0xf6   : > { %1360 = vmatprep.mubr.msk.f32.mxu1 %vm201_vm0, %v187_v30 }
  0xf7   : > { %1386 = vmatmul.mubr.msk.f32.gmra.mxu0 %vm201_vm0, %v186_v29 }
  0xf8   : > { %1388 = vmatprep.mubr.msk.f32.mxu0 %vm201_vm0, %v187_v30 }
  0xf9   : > { %1361 = vmatmul.mubr.msk.f32.gmra.mxu1 %vm201_vm0, %v188_v31 }
  0xfa   : > { %1363 = vmatprep.mubr.msk.f32.mxu1 %vm201_vm0, %v189_v32 }
  0xfb   : > { %1389 = vmatmul.mubr.msk.f32.gmra.mxu0 %vm201_vm0, %v188_v31 }
  0xfc   : > { %1391 = vmatprep.mubr.msk.f32.mxu0 %vm201_vm0, %v189_v32 }
  0xfd   : > { %1364 = vmatmul.mubr.msk.f32.gmra.mxu1 %vm201_vm0, %v190_v33 }
  0xfe   : > { %1398 = vmatprep.mubr.msk.f32.mxu1 %vm201_vm0, %v1649_v10 }
  0xff   : > { %1392 = vmatmul.mubr.msk.f32.gmra.mxu0 %vm201_vm0, %v190_v33 }
 0x100   : > { %1426 = vmatprep.mubr.msk.f32.mxu0 %vm201_vm0, %v1649_v10 }
 0x101   : > { %1399 = vmatmul.mubr.msk.f32.vlgmr.msra.gmra.mxu1 %vm201_vm0, %v1658_v15 }
 0x102   : > { %1401 = vmatprep.mubr.msk.f32.mxu1 %vm201_vm0, %v177_v19 }
 0x103   : > { %1427 = vmatmul.mubr.msk.f32.vlgmr.msra.gmra.mxu0 %vm201_vm0, %v1658_v15 }
 0x104   : > { %1429 = vmatprep.mubr.msk.f32.mxu0 %vm201_vm0, %v177_v19 }
 0x105   : > { %1402 = vmatmul.mubr.msk.f32.gmra.mxu1 %vm201_vm0, %v178_v21 }
 0x106   : > { %1404 = vmatprep.mubr.msk.f32.mxu1 %vm201_vm0, %v179_v22 }
 0x107   : > { %1430 = vmatmul.mubr.msk.f32.gmra.mxu0 %vm201_vm0, %v178_v21 }
 0x108   : > { %1432 = vmatprep.mubr.msk.f32.mxu0 %vm201_vm0, %v179_v22 }
 0x109   : > { %1405 = vmatmul.mubr.msk.f32.gmra.mxu1 %vm201_vm0, %v180_v23 }
 0x10a   : > { %1407 = vmatprep.mubr.msk.f32.mxu1 %vm201_vm0, %v181_v24 }
 0x10b   : > { %1433 = vmatmul.mubr.msk.f32.gmra.mxu0 %vm201_vm0, %v180_v23 }
 0x10c   : > { %1435 = vmatprep.mubr.msk.f32.mxu0 %vm201_vm0, %v181_v24 }
 0x10d   : > { %1408 = vmatmul.mubr.msk.f32.gmra.mxu1 %vm201_vm0, %v182_v25 }
 0x10e   : > { %1410 = vmatprep.mubr.msk.f32.mxu1 %vm201_vm0, %v183_v26 }
 0x10f   : > { %1436 = vmatmul.mubr.msk.f32.gmra.mxu0 %vm201_vm0, %v182_v25 }
 0x110   : > { %1438 = vmatprep.mubr.msk.f32.mxu0 %vm201_vm0, %v183_v26 }
 0x111   : > { %1411 = vmatmul.mubr.msk.f32.gmra.mxu1 %vm201_vm0, %v184_v27 }
 0x112   : > { %1413 = vmatprep.mubr.msk.f32.mxu1 %vm201_vm0, %v185_v28 }
 0x113   : > { %1439 = vmatmul.mubr.msk.f32.gmra.mxu0 %vm201_vm0, %v184_v27 }
 0x114   : > { %1441 = vmatprep.mubr.msk.f32.mxu0 %vm201_vm0, %v185_v28 }
 0x115   : > { %1414 = vmatmul.mubr.msk.f32.gmra.mxu1 %vm201_vm0, %v186_v29 }
 0x116   : > { %1416 = vmatprep.mubr.msk.f32.mxu1 %vm201_vm0, %v187_v30 }
 0x117   : > { %1442 = vmatmul.mubr.msk.f32.gmra.mxu0 %vm201_vm0, %v186_v29 }
 0x118   : > { %1444 = vmatprep.mubr.msk.f32.mxu0 %vm201_vm0, %v187_v30 }
 0x119   : > { %1417 = vmatmul.mubr.msk.f32.gmra.mxu1 %vm201_vm0, %v188_v31 }
 0x11a   : > { %1419 = vmatprep.mubr.msk.f32.mxu1 %vm201_vm0, %v189_v32 }
 0x11b   : > { %1445 = vmatmul.mubr.msk.f32.gmra.mxu0 %vm201_vm0, %v188_v31 }
 0x11c   : > { %1447 = vmatprep.mubr.msk.f32.mxu0 %vm201_vm0, %v189_v32 }
 0x11d   : > { %1420 = vmatmul.mubr.msk.f32.gmra.mxu1 %vm201_vm0, %v190_v33 }
 0x11f   : > { %1448 = vmatmul.mubr.msk.f32.gmra.mxu0 %vm201_vm0, %v190_v33 }
 0x19f   : > { %v1344_v34 = vpop.f32.mrf.mxu1 }
 0x1a0   : > { %525 = vst [vmem:[%s1773_s4 + $0x8] sm:$0xff] %v1344_v34 }
 0x1a1   : > { %v445_v35 = vpop.f32.mrf.mxu1 }
 0x1a2   : > { %524 = vst [vmem:[%s1773_s4] sm:$0xff] %v445_v35 }
 0x1a3   : > { %v1372_v36 = vpop.f32.mrf.mxu0 }
 0x1a4   : > { %1152 = vst [vmem:[%s1773_s4 + $0x88] sm:$0xff] %v1372_v36 }
 0x1a5   : > { %v606_v37 = vpop.f32.mrf.mxu0  ;;  %v1347_v38 = vpop.f32.mrf.mxu1 }
 0x1a6   : > { %1151 = vst [vmem:[%s1773_s4 + $0x80] sm:$0xff] %v606_v37  ;;  %527 = vst [vmem:[%s1773_s4 + $0x18] sm:$0xff] %v1347_v38 }
 0x1a7   : > { %v1375_v39 = vpop.f32.mrf.mxu0  ;;  %v455_v40 = vpop.f32.mrf.mxu1 }
 0x1a8   : > { %1154 = vst [vmem:[%s1773_s4 + $0x98] sm:$0xff] %v1375_v39  ;;  %526 = vst [vmem:[%s1773_s4 + $0x10] sm:$0xff] %v455_v40 }
 0x1a9   : > { %v616_v41 = vpop.f32.mrf.mxu0  ;;  %v1350_v42 = vpop.f32.mrf.mxu1 }
 0x1aa   : > { %1153 = vst [vmem:[%s1773_s4 + $0x90] sm:$0xff] %v616_v41  ;;  %529 = vst [vmem:[%s1773_s4 + $0x28] sm:$0xff] %v1350_v42 }
 0x1ab   : > { %v1378_v43 = vpop.f32.mrf.mxu0  ;;  %v465_v44 = vpop.f32.mrf.mxu1 }
 0x1ac   : > { %1156 = vst [vmem:[%s1773_s4 + $0xa8] sm:$0xff] %v1378_v43  ;;  %528 = vst [vmem:[%s1773_s4 + $0x20] sm:$0xff] %v465_v44 }
 0x1ad   : > { %v626_v45 = vpop.f32.mrf.mxu0  ;;  %v1353_v46 = vpop.f32.mrf.mxu1 }
 0x1ae   : > { %1155 = vst [vmem:[%s1773_s4 + $0xa0] sm:$0xff] %v626_v45  ;;  %531 = vst [vmem:[%s1773_s4 + $0x38] sm:$0xff] %v1353_v46 }
 0x1af   : > { %v1381_v47 = vpop.f32.mrf.mxu0  ;;  %v475_v48 = vpop.f32.mrf.mxu1 }
 0x1b0   : > { %1158 = vst [vmem:[%s1773_s4 + $0xb8] sm:$0xff] %v1381_v47  ;;  %530 = vst [vmem:[%s1773_s4 + $0x30] sm:$0xff] %v475_v48 }
 0x1b1   : > { %v636_v49 = vpop.f32.mrf.mxu0  ;;  %v1356_v50 = vpop.f32.mrf.mxu1 }
 0x1b2   : > { %1157 = vst [vmem:[%s1773_s4 + $0xb0] sm:$0xff] %v636_v49  ;;  %533 = vst [vmem:[%s1773_s4 + $0x48] sm:$0xff] %v1356_v50 }
 0x1b3   : > { %v1384_v51 = vpop.f32.mrf.mxu0  ;;  %v485_v52 = vpop.f32.mrf.mxu1 }
 0x1b4   : > { %1160 = vst [vmem:[%s1773_s4 + $0xc8] sm:$0xff] %v1384_v51  ;;  %532 = vst [vmem:[%s1773_s4 + $0x40] sm:$0xff] %v485_v52 }
 0x1b5   : > { %v646_v53 = vpop.f32.mrf.mxu0  ;;  %v1359_v54 = vpop.f32.mrf.mxu1 }
 0x1b6   : > { %1159 = vst [vmem:[%s1773_s4 + $0xc0] sm:$0xff] %v646_v53  ;;  %535 = vst [vmem:[%s1773_s4 + $0x58] sm:$0xff] %v1359_v54 }
 0x1b7   : > { %v1387_v55 = vpop.f32.mrf.mxu0  ;;  %v495_v56 = vpop.f32.mrf.mxu1 }
 0x1b8   : > { %1162 = vst [vmem:[%s1773_s4 + $0xd8] sm:$0xff] %v1387_v55  ;;  %534 = vst [vmem:[%s1773_s4 + $0x50] sm:$0xff] %v495_v56 }
 0x1b9   : > { %v656_v57 = vpop.f32.mrf.mxu0  ;;  %v1362_v58 = vpop.f32.mrf.mxu1 }
 0x1ba   : > { %1161 = vst [vmem:[%s1773_s4 + $0xd0] sm:$0xff] %v656_v57  ;;  %537 = vst [vmem:[%s1773_s4 + $0x68] sm:$0xff] %v1362_v58 }
 0x1bb   : > { %v1390_v59 = vpop.f32.mrf.mxu0  ;;  %v505_v60 = vpop.f32.mrf.mxu1 }
 0x1bc   : > { %1164 = vst [vmem:[%s1773_s4 + $0xe8] sm:$0xff] %v1390_v59  ;;  %536 = vst [vmem:[%s1773_s4 + $0x60] sm:$0xff] %v505_v60 }
 0x1bd   : > { %v666_v61 = vpop.f32.mrf.mxu0  ;;  %v1365_v62 = vpop.f32.mrf.mxu1 }
 0x1be   : > { %1163 = vst [vmem:[%s1773_s4 + $0xe0] sm:$0xff] %v666_v61  ;;  %539 = vst [vmem:[%s1773_s4 + $0x78] sm:$0xff] %v1365_v62 }
 0x1bf   : > { %v1393_v63 = vpop.f32.mrf.mxu0  ;;  %v515_v0 = vpop.f32.mrf.mxu1 }
 0x1c0   : > { %1166 = vst [vmem:[%s1773_s4 + $0xf8] sm:$0xff] %v1393_v63  ;;  %538 = vst [vmem:[%s1773_s4 + $0x70] sm:$0xff] %v515_v0 }
 0x1c1   : > { %v676_v1 = vpop.f32.mrf.mxu0  ;;  %v1400_v2 = vpop.f32.mrf.mxu1 }
 0x1c2   : > { %1165 = vst [vmem:[%s1773_s4 + $0xf0] sm:$0xff] %v676_v1  ;;  %1184 = vst [vmem:[%s1773_s4 + $0x108] sm:$0xff] %v1400_v2 }
 0x1c3   : > { %v1428_v3 = vpop.f32.mrf.mxu0  ;;  %v768_v4 = vpop.f32.mrf.mxu1 }
 0x1c4   : > { %1216 = vst [vmem:[%s1773_s4 + $0x188] sm:$0xff] %v1428_v3  ;;  %1183 = vst [vmem:[%s1773_s4 + $0x100] sm:$0xff] %v768_v4 }
 0x1c5   : > { %v930_v5 = vpop.f32.mrf.mxu0  ;;  %v1403_v6 = vpop.f32.mrf.mxu1 }
 0x1c6   : > { %1215 = vst [vmem:[%s1773_s4 + $0x180] sm:$0xff] %v930_v5  ;;  %1186 = vst [vmem:[%s1773_s4 + $0x118] sm:$0xff] %v1403_v6 }
 0x1c7   : > { %v1431_v7 = vpop.f32.mrf.mxu0  ;;  %v778_v8 = vpop.f32.mrf.mxu1 }
 0x1c8   : > { %1218 = vst [vmem:[%s1773_s4 + $0x198] sm:$0xff] %v1431_v7  ;;  %1185 = vst [vmem:[%s1773_s4 + $0x110] sm:$0xff] %v778_v8 }
 0x1c9   : > { %v940_v9 = vpop.f32.mrf.mxu0  ;;  %v1406_v10 = vpop.f32.mrf.mxu1 }
 0x1ca   : > { %1217 = vst [vmem:[%s1773_s4 + $0x190] sm:$0xff] %v940_v9  ;;  %1188 = vst [vmem:[%s1773_s4 + $0x128] sm:$0xff] %v1406_v10 }
 0x1cb   : > { %v1434_v11 = vpop.f32.mrf.mxu0  ;;  %v788_v12 = vpop.f32.mrf.mxu1 }
 0x1cc   : > { %1220 = vst [vmem:[%s1773_s4 + $0x1a8] sm:$0xff] %v1434_v11  ;;  %1187 = vst [vmem:[%s1773_s4 + $0x120] sm:$0xff] %v788_v12 }
 0x1cd   : > { %v950_v13 = vpop.f32.mrf.mxu0  ;;  %v1409_v14 = vpop.f32.mrf.mxu1 }
 0x1ce   : > { %1219 = vst [vmem:[%s1773_s4 + $0x1a0] sm:$0xff] %v950_v13  ;;  %1190 = vst [vmem:[%s1773_s4 + $0x138] sm:$0xff] %v1409_v14 }
 0x1cf   : > { %v1437_v15 = vpop.f32.mrf.mxu0  ;;  %v798_v16 = vpop.f32.mrf.mxu1 }
 0x1d0   : > { %1222 = vst [vmem:[%s1773_s4 + $0x1b8] sm:$0xff] %v1437_v15  ;;  %1189 = vst [vmem:[%s1773_s4 + $0x130] sm:$0xff] %v798_v16 }
 0x1d1   : > { %v960_v17 = vpop.f32.mrf.mxu0  ;;  %v1412_v18 = vpop.f32.mrf.mxu1 }
 0x1d2   : > { %1221 = vst [vmem:[%s1773_s4 + $0x1b0] sm:$0xff] %v960_v17  ;;  %1192 = vst [vmem:[%s1773_s4 + $0x148] sm:$0xff] %v1412_v18 }
 0x1d3   : > { %v1440_v19 = vpop.f32.mrf.mxu0  ;;  %v808_v20 = vpop.f32.mrf.mxu1 }
 0x1d4   : > { %1224 = vst [vmem:[%s1773_s4 + $0x1c8] sm:$0xff] %v1440_v19  ;;  %1191 = vst [vmem:[%s1773_s4 + $0x140] sm:$0xff] %v808_v20 }
 0x1d5   : > { %v970_v21 = vpop.f32.mrf.mxu0  ;;  %v1415_v22 = vpop.f32.mrf.mxu1 }
 0x1d6   : > { %1223 = vst [vmem:[%s1773_s4 + $0x1c0] sm:$0xff] %v970_v21  ;;  %1194 = vst [vmem:[%s1773_s4 + $0x158] sm:$0xff] %v1415_v22 }
 0x1d7   : > { %v1443_v23 = vpop.f32.mrf.mxu0  ;;  %v818_v24 = vpop.f32.mrf.mxu1 }
 0x1d8   : > { %1226 = vst [vmem:[%s1773_s4 + $0x1d8] sm:$0xff] %v1443_v23  ;;  %1193 = vst [vmem:[%s1773_s4 + $0x150] sm:$0xff] %v818_v24 }
 0x1d9   : > { %v980_v25 = vpop.f32.mrf.mxu0  ;;  %v1418_v26 = vpop.f32.mrf.mxu1 }
 0x1da   : > { %1225 = vst [vmem:[%s1773_s4 + $0x1d0] sm:$0xff] %v980_v25  ;;  %1196 = vst [vmem:[%s1773_s4 + $0x168] sm:$0xff] %v1418_v26 }
 0x1db   : > { %v1446_v27 = vpop.f32.mrf.mxu0  ;;  %v828_v28 = vpop.f32.mrf.mxu1 }
 0x1dc   : > { %1228 = vst [vmem:[%s1773_s4 + $0x1e8] sm:$0xff] %v1446_v27  ;;  %1195 = vst [vmem:[%s1773_s4 + $0x160] sm:$0xff] %v828_v28 }
 0x1dd   : > { %v990_v29 = vpop.f32.mrf.mxu0  ;;  %v1421_v30 = vpop.f32.mrf.mxu1 }
 0x1de   : > { %1227 = vst [vmem:[%s1773_s4 + $0x1e0] sm:$0xff] %v990_v29  ;;  %1198 = vst [vmem:[%s1773_s4 + $0x178] sm:$0xff] %v1421_v30 }
 0x1df   : > { %v1449_v31 = vpop.f32.mrf.mxu0  ;;  %v838_v32 = vpop.f32.mrf.mxu1 }
 0x1e0   : > { %1230 = vst [vmem:[%s1773_s4 + $0x1f8] sm:$0xff] %v1449_v31  ;;  %1197 = vst [vmem:[%s1773_s4 + $0x170] sm:$0xff] %v838_v32 }
 0x1e1   : > { %v1000_v33 = vpop.f32.mrf.mxu0 }
 0x1e2   : > { %1229 = vst [vmem:[%s1773_s4 + $0x1f0] sm:$0xff] %v1000_v33 }
 0x1e3   : > { %1508 = shalt.err (!%p1505_p3)
}
 0x1e4   : > { %s1509_s20 = scalar_lea.hbm %s1841_s9, 8192  ;;  %s1513_s26 = scalar_lea.hbm %s1893_s3, 16384 }
 0x1e5   : > { %p1510_p4 = scmp.ne.s32.totalorder %s1841_s9, %s1509_s20  ;;  %p1514_p9 = scmp.lt.s32.totalorder %s1841_s9, %s1893_s3 }
 0x1e6   : > { %p1515_p10 = scmp.lt.s32.totalorder %s1513_s26, %s1509_s20 }
 0x1e7   : > { %p1511_p7 = pnand %p1510_p4, %p1618_p5 }
 0x1e8   : > { %p1516_p11 = por %p1515_p10, %p1514_p9 }
 0x1e9   : > { %p1512_p8 = pneg %p1511_p7 }
 0x1eb   : > { %p1517_p12 = pnand %p1516_p11, %p1512_p8 }
 0x1ed   : > { %1520 = shalt.err (!%p1517_p12)
}
 0x1ee   : > { %s1558_s29 = smov 128   ;;  %s1559_s30 = smov 8  }
 0x1ef   : > { %1454 = dma.vmem_to_hbm [thread:$0]  (%p1618_p5), %s1843_s6, 8192, %s1841_s9, %s1850_s16, %s1558_s29, %s1558_s29, %s1559_s30  }
 0x1f0 PF: > { %p1460_p13 = scmp.ge.s32.totalorder %s1555_s15, 2  ;;  %s1056_s4 = sand.u32 1, %s1543_s12  }
 0x1f1   : > { %s1057_s5 = scalar_lea.sflag [#allocation3], %s1056_s4 }
 0x1f2   : > { %p1457_p0 = pnand %p1460_p13, %p1622_p6 }
 0x1f4   : > { %p1458_p1 = pneg %p1457_p0 }
 0x1f6   : > { %1538 = dma.done.wait (%p1458_p1), %s1057_s5, 8192  }
 0x1f7   : > { %1540 = vsyncadd (%p1458_p1), %s1057_s5, 4294959104  ;;  %p13_p2 = scmp.ge.s32.totalorder %s1605_s18, 4   ;;  %s1896_s12 = smov %s1547_s13 }
 0x1f8   : > { %s1897_s13 = smov %s1551_s14  ;;  %s1898_s14 = smov %s1616_s21 }
 0x1f9   : > { %s1899_s15 = smov %s1605_s18  ;;  %15 = sbr.rel (!%p13_p2) target bundleno = 3 (0x3), region = 70 }
 0x1fe   :  { %1062 = vsyncpa [#allocation3], 1 }
 0x1ff   :  { %1064 = vsyncpa [#allocation3 + $0x1], 1 }

</bundles_post_ra>
